<compile_context>
chip_gen: v5e
topology: v5e:2x2
jax: 0.10.0
libtpu: 0.0.40
codegen_flags: <defaults>
</compile_context>

<pallas_src>
import functools
from typing import List, Tuple

import jax
import jax.numpy as jnp
from jax.experimental import pallas as pl
from jax.experimental.pallas import tpu as pltpu


def _round_up(x: int, m: int) -> int:
    return ((x + m - 1) // m) * m


def _mlp_kernel(n_layers: int, *refs):
    """refs = (xT_ref, w0, b0, w1, b1, ..., w_{L-1}, b_{L-1}, out_ref).

    xT_ref : (n_in, TILE_M)   -- samples on lanes
    w_i    : (out_i, in_i)    -- resident in VMEM (constant index_map)
    b_i    : (out_i, 1)
    out_ref: (n_out, TILE_M)  -- lane-dense store
    """
    xT_ref = refs[0]
    out_ref = refs[-1]
    param_refs = refs[1:-1]

    h = xT_ref[...]  # (n_in, TILE_M), f32
    tile_m = h.shape[1]

    for i in range(n_layers):
        w = param_refs[2 * i][...]       # (out_i, in_i)
        b = param_refs[2 * i + 1][...]   # (out_i, 1)
        in_dim = w.shape[1]
        out_dim = w.shape[0]

        if in_dim <= 4:
            # Tiny contraction depth (e.g. the n_in=2 first layer): unrolled
            # VPU broadcast-FMAs instead of a wasted MXU systolic pass.
            acc = jnp.broadcast_to(b, (out_dim, tile_m))
            for k in range(in_dim):
                acc = acc + w[:, k:k + 1] * h[k:k + 1, :]
            h = acc
        else:
            h = jnp.dot(w, h, preferred_element_type=jnp.float32) + b

        if i < n_layers - 1:  # Tanh after every layer except the last (popped)
            h = jnp.tanh(h)

    out_ref[...] = h.astype(out_ref.dtype)


def init_params(key, n_in: int, n_hidden: List[int], n_out: int):
    """Parameter init mirroring torch.nn.Linear defaults U(-1/sqrt(in), 1/sqrt(in)).

    Returns a flat list [W0, b0, W1, b1, ...] with W_i of shape (out_i, in_i)
    (torch layout) and b_i of shape (out_i, 1).
    """
    arch = [n_in] + list(n_hidden) + [n_out]
    params = []
    for fan_in, fan_out in zip(arch, arch[1:]):
        key, kw, kb = jax.random.split(key, 3)
        bound = 1.0 / float(fan_in) ** 0.5
        w = jax.random.uniform(kw, (fan_out, fan_in), jnp.float32, -bound, bound)
        b = jax.random.uniform(kb, (fan_out, 1), jnp.float32, -bound, bound)
        params += [w, b]
    return params


@jax.jit
def nn_forward(x: jnp.ndarray, params) -> Tuple[jnp.ndarray, jnp.ndarray]:
    """Equivalent of NN.forward: returns (prediction, coordinates)."""
    n_samples, n_in = x.shape
    n_layers = len(params) // 2
    n_out = params[-1].shape[0]

    # Tile the sample dimension: biggest tile up to 512 lanes-worth, padded so
    # every block is lane-aligned (multiple of 128) and the grid divides evenly.
    tile_m = min(512, _round_up(n_samples, 128))
    padded = _round_up(n_samples, tile_m)
    n_tiles = padded // tile_m

    # Transpose once in the wrapper so samples ride the lane axis in-kernel.
    xT = jnp.pad(x.T.astype(jnp.float32), ((0, 0), (0, padded - n_samples)))

    kernel = functools.partial(_mlp_kernel, n_layers)

    flops = 2 * padded * sum(int(w.shape[0]) * int(w.shape[1]) for w in params[::2])
    transcendentals = padded * sum(int(w.shape[0]) for w in params[0:-2:2])
    bytes_accessed = 4 * (x.size + n_samples * n_out + sum(int(p.size) for p in params))

    out_padded = pl.pallas_call(
        kernel,
        out_shape=jax.ShapeDtypeStruct((n_out, padded), jnp.float32),
        grid=(n_tiles,),
        in_specs=[pl.BlockSpec((n_in, tile_m), lambda i: (0, i))]
        + [pl.BlockSpec(p.shape, lambda i: (0, 0)) for p in params],
        out_specs=pl.BlockSpec((n_out, tile_m), lambda i: (0, i)),
        compiler_params=pltpu.CompilerParams(
            dimension_semantics=("parallel",)),
        cost_estimate=pl.CostEstimate(
            flops=flops,
            transcendentals=transcendentals,
            bytes_accessed=bytes_accessed),
    )(xT, *params)

    pred = out_padded[:, :n_samples].T.astype(x.dtype)  # (n_samples, n_out)

    # `coordinates = input.clone().detach().requires_grad_(True)` — autodiff
    # bookkeeping is implicit in JAX; just return the coordinates.
    coordinates = x
    return pred, coordinates


if __name__ == "__main__":
    # Small shapes consistent with the module: (n_samples, n_in) -> (n_samples, n_out)
    n_samples, n_in, n_hidden, n_out = 64, 2, [32, 32], 1

    key = jax.random.PRNGKey(0)
    key, kx = jax.random.split(key)
    x = jax.random.normal(kx, (n_samples, n_in), dtype=jnp.float32)

    params = init_params(key, n_in, n_hidden, n_out)

    pred, coords = nn_forward(x, params)
    jax.block_until_ready(pred)
    jax.block_until_ready(coords)

    assert pred.shape == (n_samples, n_out)
    assert coords.shape == (n_samples, n_in)

    # Sanity check against a plain-JAX reference of the same MLP.
    def ref_forward(x, params):
        h = x.T
        L = len(params) // 2
        for i in range(L):
            h = params[2 * i] @ h + params[2 * i + 1]
            if i < L - 1:
                h = jnp.tanh(h)
        return h.T

    ref = ref_forward(x, params)
    assert jnp.allclose(pred, ref, atol=1e-5, rtol=1e-5)

    print("KERNEL_OK")
</pallas_src>

<mosaic_0001>
module attributes {stable_mosaic.version = 11 : i64} {
  func.func @_mlp_kernel(%arg0: i32, %arg1: memref<2x128xf32, #tpu.memory_space<vmem>>, %arg2: memref<32x2xf32, #tpu.memory_space<vmem>>, %arg3: memref<32x1xf32, #tpu.memory_space<vmem>>, %arg4: memref<32x32xf32, #tpu.memory_space<vmem>>, %arg5: memref<32x1xf32, #tpu.memory_space<vmem>>, %arg6: memref<1x32xf32, #tpu.memory_space<vmem>>, %arg7: memref<1x1xf32, #tpu.memory_space<vmem>>, %arg8: memref<1x128xf32, #tpu.memory_space<vmem>>) attributes {dimension_semantics = [#tpu.dimension_semantics<parallel>], iteration_bounds = array<i64: 1>, scalar_prefetch = 0 : i64, scratch_operands = 0 : i64, tpu.core_type = #tpu.core_type<tc>, window_params = [{transform_indices = @transform_0, window_bounds = array<i64: 2, 128>}, {pipeline_mode = #tpu.pipeline_mode<synchronous>, transform_indices = @transform_1, window_bounds = array<i64: 32, 2>}, {pipeline_mode = #tpu.pipeline_mode<synchronous>, transform_indices = @transform_2, window_bounds = array<i64: 32, 1>}, {pipeline_mode = #tpu.pipeline_mode<synchronous>, transform_indices = @transform_3, window_bounds = array<i64: 32, 32>}, {pipeline_mode = #tpu.pipeline_mode<synchronous>, transform_indices = @transform_4, window_bounds = array<i64: 32, 1>}, {pipeline_mode = #tpu.pipeline_mode<synchronous>, transform_indices = @transform_5, window_bounds = array<i64: 1, 32>}, {pipeline_mode = #tpu.pipeline_mode<synchronous>, transform_indices = @transform_6, window_bounds = array<i64: 1, 1>}, {transform_indices = @transform_7, window_bounds = array<i64: 1, 128>}]} {
    %c0 = arith.constant 0 : index
    %c0_0 = arith.constant 0 : index
    %0 = vector.load %arg1[%c0, %c0_0] : memref<2x128xf32, #tpu.memory_space<vmem>>, vector<2x128xf32>
    %c0_1 = arith.constant 0 : index
    %c0_2 = arith.constant 0 : index
    %1 = vector.load %arg2[%c0_1, %c0_2] : memref<32x2xf32, #tpu.memory_space<vmem>>, vector<32x2xf32>
    %c0_3 = arith.constant 0 : index
    %c0_4 = arith.constant 0 : index
    %2 = vector.load %arg3[%c0_3, %c0_4] : memref<32x1xf32, #tpu.memory_space<vmem>>, vector<32x1xf32>
    %3 = vector.shape_cast %2 : vector<32x1xf32> to vector<32x1xf32>
    %4 = vector.broadcast %3 : vector<32x1xf32> to vector<32x128xf32>
    %5 = vector.extract_strided_slice %1 {offsets = [0, 0], sizes = [32, 1], strides = [1, 1]} : vector<32x2xf32> to vector<32x1xf32>
    %6 = vector.extract_strided_slice %0 {offsets = [0, 0], sizes = [1, 128], strides = [1, 1]} : vector<2x128xf32> to vector<1x128xf32>
    %7 = vector.broadcast %5 : vector<32x1xf32> to vector<32x128xf32>
    %8 = vector.broadcast %6 : vector<1x128xf32> to vector<32x128xf32>
    %9 = arith.mulf %7, %8 : vector<32x128xf32>
    %10 = arith.addf %4, %9 : vector<32x128xf32>
    %11 = vector.extract_strided_slice %1 {offsets = [0, 1], sizes = [32, 1], strides = [1, 1]} : vector<32x2xf32> to vector<32x1xf32>
    %12 = vector.extract_strided_slice %0 {offsets = [1, 0], sizes = [1, 128], strides = [1, 1]} : vector<2x128xf32> to vector<1x128xf32>
    %13 = vector.broadcast %11 : vector<32x1xf32> to vector<32x128xf32>
    %14 = vector.broadcast %12 : vector<1x128xf32> to vector<32x128xf32>
    %15 = arith.mulf %13, %14 : vector<32x128xf32>
    %16 = arith.addf %10, %15 : vector<32x128xf32>
    %17 = math.tanh %16 : vector<32x128xf32>
    %c0_5 = arith.constant 0 : index
    %c0_6 = arith.constant 0 : index
    %18 = vector.load %arg4[%c0_5, %c0_6] : memref<32x32xf32, #tpu.memory_space<vmem>>, vector<32x32xf32>
    %c0_7 = arith.constant 0 : index
    %c0_8 = arith.constant 0 : index
    %19 = vector.load %arg5[%c0_7, %c0_8] : memref<32x1xf32, #tpu.memory_space<vmem>>, vector<32x1xf32>
    %cst = arith.constant dense<0.000000e+00> : vector<32x128xf32>
    %20 = tpu.matmul %18, %17, %cst {dimension_numbers = #tpu.dot_dimension_numbers<[1], [0], [0], [1], [0, 0, 1, 1], [], []>} : vector<32x32xf32>, vector<32x128xf32>, vector<32x128xf32> -> vector<32x128xf32>
    %21 = vector.broadcast %19 : vector<32x1xf32> to vector<32x128xf32>
    %22 = arith.addf %20, %21 : vector<32x128xf32>
    %23 = math.tanh %22 : vector<32x128xf32>
    %c0_9 = arith.constant 0 : index
    %c0_10 = arith.constant 0 : index
    %24 = vector.load %arg6[%c0_9, %c0_10] : memref<1x32xf32, #tpu.memory_space<vmem>>, vector<1x32xf32>
    %c0_11 = arith.constant 0 : index
    %c0_12 = arith.constant 0 : index
    %25 = vector.load %arg7[%c0_11, %c0_12] : memref<1x1xf32, #tpu.memory_space<vmem>>, vector<1x1xf32>
    %cst_13 = arith.constant dense<0.000000e+00> : vector<1x128xf32>
    %26 = tpu.matmul %24, %23, %cst_13 {dimension_numbers = #tpu.dot_dimension_numbers<[1], [0], [0], [1], [0, 0, 1, 1], [], []>} : vector<1x32xf32>, vector<32x128xf32>, vector<1x128xf32> -> vector<1x128xf32>
    %27 = vector.broadcast %25 : vector<1x1xf32> to vector<1x128xf32>
    %28 = arith.addf %26, %27 : vector<1x128xf32>
    %c0_14 = arith.constant 0 : index
    %c0_15 = arith.constant 0 : index
    %29 = vector.load %arg8[%c0_14, %c0_15] : memref<1x128xf32, #tpu.memory_space<vmem>>, vector<1x128xf32>
    tpu.vector_store %arg8[%c0_14, %c0_15], %28 {strides = array<i32>} : memref<1x128xf32, #tpu.memory_space<vmem>>, vector<1x128xf32>,
    return
  }
  func.func @transform_0(%arg0: i32) -> (i32, i32) {
    %c0_i32 = arith.constant 0 : i32
    %c0_i32_0 = arith.constant 0 : i32
    return %c0_i32, %arg0 : i32, i32
  }
  func.func @transform_1(%arg0: i32) -> (i32, i32) {
    %c0_i32 = arith.constant 0 : i32
    %c0_i32_0 = arith.constant 0 : i32
    %c0_i32_1 = arith.constant 0 : i32
    return %c0_i32, %c0_i32_0 : i32, i32
  }
  func.func @transform_2(%arg0: i32) -> (i32, i32) {
    %c0_i32 = arith.constant 0 : i32
    %c0_i32_0 = arith.constant 0 : i32
    %c0_i32_1 = arith.constant 0 : i32
    return %c0_i32, %c0_i32_0 : i32, i32
  }
  func.func @transform_3(%arg0: i32) -> (i32, i32) {
    %c0_i32 = arith.constant 0 : i32
    %c0_i32_0 = arith.constant 0 : i32
    %c0_i32_1 = arith.constant 0 : i32
    return %c0_i32, %c0_i32_0 : i32, i32
  }
  func.func @transform_4(%arg0: i32) -> (i32, i32) {
    %c0_i32 = arith.constant 0 : i32
    %c0_i32_0 = arith.constant 0 : i32
    %c0_i32_1 = arith.constant 0 : i32
    return %c0_i32, %c0_i32_0 : i32, i32
  }
  func.func @transform_5(%arg0: i32) -> (i32, i32) {
    %c0_i32 = arith.constant 0 : i32
    %c0_i32_0 = arith.constant 0 : i32
    %c0_i32_1 = arith.constant 0 : i32
    return %c0_i32, %c0_i32_0 : i32, i32
  }
  func.func @transform_6(%arg0: i32) -> (i32, i32) {
    %c0_i32 = arith.constant 0 : i32
    %c0_i32_0 = arith.constant 0 : i32
    %c0_i32_1 = arith.constant 0 : i32
    return %c0_i32, %c0_i32_0 : i32, i32
  }
  func.func @transform_7(%arg0: i32) -> (i32, i32) {
    %c0_i32 = arith.constant 0 : i32
    %c0_i32_0 = arith.constant 0 : i32
    return %c0_i32, %arg0 : i32, i32
  }
}

</mosaic_0001>

<bundles_post_ra>
// kernel: nn_forward.1
= control target key start
LH: loop header
LB: loop body
LE: loop exit
PB: predicated region body
PF: predicated region fallthrough
CT: control target
= control target key end

     0   :  { %v265_v0 = vmov 0   ;;  %v266_v7 = vmov 1   ;;  %vm143_vm0 = vcmask 261120   ;;  %s372_s2 = inlined_call_operand.vmem [shape: f32[32,1], index: 2, kind: input, shape index: {}]   ;;  %s373_s1 = inlined_call_operand.vmem [shape: f32[32,2], index: 1, kind: input, shape index: {}]   ;;  %s374_s6 = inlined_call_operand.<no memory space> [shape: f32[1,1], index: 6, kind: input, shape index: {}]   ;;  %s375_s4 = inlined_call_operand.vmem [shape: f32[32,1], index: 4, kind: input, shape index: {}]   ;;  %s376_s0 = inlined_call_operand.vmem [shape: f32[2,128], index: 0, kind: input, shape index: {}]   ;;  %s377_s3 = inlined_call_operand.vmem [shape: f32[32,32], index: 3, kind: input, shape index: {}]   ;;  %s378_s5 = inlined_call_operand.vmem [shape: f32[1,32], index: 5, kind: input, shape index: {}]   ;;  %s379_s7 = inlined_call_operand.vmem [shape: f32[1,128], index: 7, kind: output, shape index: {}]  }
   0x1   :  { %243 = vset.pattern.permute.xlu2 %v265_v0  ;;  %241 = vset.pattern.permute.xlu1 %v265_v0  ;;  %v35_v1 = vld [vmem:[%s372_s2 + $0x10] sm:$0xff]  ;;  %v32_v2 = vld [vmem:[%s373_s1 + $0x18] sm:$0xff]  ;;  %v12_v4 = vstv %s374_s6  ;;  %v30_v5 = vld [vmem:[%s373_s1 + $0x8] sm:$0xff] }
   0x2   :  { %v31_v3 = vld [vmem:[%s373_s1 + $0x10] sm:$0xff]  ;;  %240 = vset.pattern.permute.xlu0 %v265_v0  ;;  %49 = vperm.xlu2 %243, %v35_v1   ;;  %13 = vst [vmem:[#allocation2] sm:$0x1] %v12_v4  ;;  %v36_v6 = vld [vmem:[%s372_s2 + $0x18] sm:$0xff]  ;;  %v29_v8 = vld [vmem:[%s373_s1] sm:$0xff] }
   0x3   :  { %74 = vperm.xlu0 %240, %v32_v2   ;;  %69 = vperm.xlu1 %241, %v31_v3   ;;  %v34_v9 = vld [vmem:[%s372_s2 + $0x8] sm:$0xff]  ;;  %v33_v10 = vld [vmem:[%s372_s2] sm:$0xff]  ;;  %v121_v11 = vld [vmem:[%s375_s4 + $0x10] sm:$0xff] }
   0x4   :  { %v28_v16 = vld [vmem:[%s376_s0] sm:$0x3]  ;;  %v122_v32 = vld [vmem:[%s375_s4 + $0x18] sm:$0xff]  ;;  %v120_v35 = vld [vmem:[%s375_s4 + $0x8] sm:$0xff] }
   0x5   :  { %v77_v17 = vperm.slane %v28_v16, 0  ;;  %v102_v18 = vperm.slane %v28_v16, 1  ;;  %v119_v38 = vld [vmem:[%s375_s4] sm:$0xff]  ;;  %v117_v52 = vld [vmem:[%s377_s3 + $0x10] sm:$0xff]  ;;  %v116_v53 = vld [vmem:[%s377_s3 + $0x8] sm:$0xff] }
   0x6   :  { %v115_v50 = vld [vmem:[%s377_s3] sm:$0xff]  ;;  %v118_v54 = vld [vmem:[%s377_s3 + $0x18] sm:$0xff] }
   0x9   :  { %v190_v12 = vld [vmem:[#allocation2] sm:$0x1] }
   0xa   :  { %64 = vperm.xlu2 %243, %v30_v5  }
   0xb   :  { %54 = vperm.xlu0 %240, %v36_v6   ;;  %242 = vset.pattern.permute.xlu1 %v266_v7  ;;  %v189_v6 = vld [vmem:[%s378_s5] sm:$0x1] }
   0xc   :  { %99 = vperm.xlu1 %242, %v32_v2  }
  0x12   :  { %59 = vperm.xlu2 %243, %v29_v8  }
  0x13   :  { %244 = vset.pattern.permute.xlu0 %v266_v7 }
  0x14   :  { %95 = vperm.xlu0 %244, %v31_v3   ;;  %245 = vset.pattern.permute.xlu1 %v265_v0 }
  0x15   :  { %44 = vperm.xlu1 %245, %v34_v9  }
  0x1a   :  { %39 = vperm.xlu2 %243, %v33_v10  }
  0x1c   :  { %87 = vperm.xlu0 %244, %v29_v8  }
  0x1d   :  { %246 = vset.pattern.permute.xlu1 %v266_v7 }
  0x1e   :  { %91 = vperm.xlu1 %246, %v30_v5  }
  0x22   :  { %135 = vperm.xlu2 %243, %v121_v11  }
  0x24   :  { %248 = vset.pattern.permute.xlu0 %v265_v0 }
  0x25   :  { %130 = vperm.xlu0 %248, %v120_v35  }
  0x26   :  { %247 = vset.pattern.permute.xlu1 %v265_v0 }
  0x27   :  { %140 = vperm.xlu1 %247, %v122_v32  }
  0x2a   :  { %193 = vperm.xlu2 %243, %v190_v12  }
  0x2f   :  { %125 = vperm.xlu1 %247, %v119_v38  }
  0x5c   :  { %v50_v13 = vpop.permute.xlu2 %49 }
  0x64   :  { %v65_v19 = vpop.permute.xlu2 %64 }
  0x65   :  { %v79_v39 = vmul.f32 %v77_v17, %v65_v19 }
  0x6c   :  { %v60_v27 = vpop.permute.xlu2 %59 }
  0x6d   :  { %v78_v36 = vmul.f32 %v77_v17, %v60_v27 }
  0x74   :  { %v40_v41 = vpop.permute.xlu2 %39 }
  0x75   :  { %v75_v14 = vpop.permute.xlu0 %74  ;;  %v70_v15 = vpop.permute.xlu1 %69  ;;  %v82_v44 = vadd.f32 %v78_v36, %v40_v41 }
  0x76   :  { %v81_v20 = vmul.f32 %v77_v17, %v75_v14  ;;  %v80_v26 = vmul.f32 %v77_v17, %v70_v15 }
  0x78   :  { %v84_v29 = vadd.f32 %v80_v26, %v50_v13 }
  0x7c   :  { %v136_v59 = vpop.permute.xlu2 %135 }
  0x7d   :  { %v55_v21 = vpop.permute.xlu0 %54 }
  0x7e   :  { %v85_v22 = vadd.f32 %v81_v20, %v55_v21  ;;  %v100_v23 = vpop.permute.xlu1 %99 }
  0x7f   :  { %v106_v24 = vmul.f32 %v102_v18, %v100_v23 }
  0x81   :  { %v110_v25 = vadd.f32 %v106_v24, %v85_v22 }
  0x83   :  { %249 = vtanh.f32 %v110_v25 }
  0x84   :  { %v194_v8 = vpop.permute.xlu2 %193 }
  0x85   :  { %v196_v9 = vperm.slane %v194_v8, 0 }
  0x86   :  { %v96_v28 = vpop.permute.xlu0 %95 }
  0x87   :  { %v105_v30 = vmul.f32 %v102_v18, %v96_v28  ;;  %v45_v31 = vpop.permute.xlu1 %44 }
  0x88   :  { %v83_v45 = vadd.f32 %v79_v39, %v45_v31 }
  0x89   :  { %v250_v33 = vpop.eup %249  ;;  %v109_v34 = vadd.f32 %v105_v30, %v84_v29 }
  0x8a   :  { %168 = vmatpush.msra.mxu0 %v250_v33  ;;  %230 = vmatpush.msra.mxu2 %v250_v33 }
  0x8b   :  { %251 = vtanh.f32 %v109_v34  ;;  %231 = vmatpush.msra.mxu3 %v250_v33 }
  0x8e   :  { %v88_v37 = vpop.permute.xlu0 %87 }
  0x8f   :  { %v103_v40 = vmul.f32 %v102_v18, %v88_v37 }
  0x90   :  { %v92_v42 = vpop.permute.xlu1 %91 }
  0x91   :  { %v252_v43 = vpop.eup %251  ;;  %v104_v46 = vmul.f32 %v102_v18, %v92_v42  ;;  %v107_v47 = vadd.f32 %v103_v40, %v82_v44 }
  0x92   :  { %169 = vmatpush.msra.mxu0 %v252_v43  ;;  %232 = vmatpush.msra.mxu2 %v252_v43 }
  0x93   :  { %v108_v48 = vadd.f32 %v104_v46, %v83_v45  ;;  %233 = vmatpush.msra.mxu3 %v252_v43 }
  0x95   :  { %253 = vtanh.f32 %v108_v48 }
  0x96   :  { %255 = vtanh.f32 %v107_v47 }
  0x97   :  { %v131_v57 = vpop.permute.xlu0 %130 }
  0x99   :  { %v141_v55 = vpop.permute.xlu1 %140 }
  0x9b   :  { %v254_v49 = vpop.eup %253 }
  0x9c   :  { %170 = vmatpush.msra.mxu0 %v254_v49  ;;  %234 = vmatpush.msra.mxu2 %v254_v49  ;;  %v256_v51 = vpop.eup %255 }
  0x9d   :  { %235 = vmatpush.msra.mxu3 %v254_v49 }
  0x9e   :  { %171 = vmatpush.msra.mxu0 %v256_v51  ;;  %236 = vmatpush.msra.mxu2 %v256_v51 }
  0x9f   :  { %237 = vmatpush.msra.mxu3 %v256_v51  ;;  %225 = vmatmul.msk.f32.vlgmr.msra.gmra.mxu0 %vm143_vm0, %v115_v50 }
  0xa0   :  { %227 = vmatmul.msk.f32.vlgmr.msra.gmra.mxu3 %vm143_vm0, %v117_v52  ;;  %226 = vmatmul.msk.f32.vlgmr.msra.gmra.mxu2 %vm143_vm0, %v116_v53 }
  0xa1   :  { %v126_v0 = vpop.permute.xlu1 %125 }
  0xa8   :  { %228 = vmatmul.msk.f32.gmra.mxu3 %vm143_vm0, %v118_v54 }
 0x11c   :  { %v173_v1 = vpop.f32.mrf.mxu0 }
 0x11d   :  { %v174_v2 = vadd.f32 %v173_v1, %v126_v0 }
 0x123   :  { %v179_v56 = vpop.f32.mrf.mxu3  ;;  %v176_v58 = vpop.f32.mrf.mxu2 }
 0x124   :  { %v180_v60 = vadd.f32 %v179_v56, %v136_v59  ;;  %v177_v63 = vadd.f32 %v176_v58, %v131_v57 }
 0x12b   :  { %v182_v61 = vpop.f32.mrf.mxu3 }
 0x12c   :  { %v183_v62 = vadd.f32 %v182_v61, %v141_v55 }
 0x12e   :  { %257 = vtanh.f32 %v183_v62 }
 0x12f   :  { %259 = vtanh.f32 %v180_v60 }
 0x130   :  { %261 = vtanh.f32 %v177_v63 }
 0x131   :  { %263 = vtanh.f32 %v174_v2 }
 0x134   :  { %v258_v3 = vpop.eup %257 }
 0x135   :  { %v260_v4 = vpop.eup %259  ;;  %212 = vmatpush.msra.mxu1 %v258_v3 }
 0x136   :  { %v262_v5 = vpop.eup %261 }
 0x137   :  { %213 = vmatpush.msra.mxu1 %v260_v4  ;;  %v264_v7 = vpop.eup %263 }
 0x139   :  { %214 = vmatpush.msra.mxu1 %v262_v5 }
 0x13b   :  { %215 = vmatpush.msra.mxu1 %v264_v7 }
 0x13c   :  { %229 = vmatmul.msk.f32.vlgmr.msra.gmra.mxu1 %vm143_vm0, %v189_v6 }
 0x1b9   :  { %v217_v10 = vpop.f32.mrf.mxu1 }
 0x1ba   :  { %v218_v11 = vadd.f32 %v217_v10, %v196_v9 }
 0x1bc   :  { %220 = vst [vmem:[%s379_s7] sm:$0x1] %v218_v11 }

</bundles_post_ra>
